<compile_context>
chip_gen: v7x
topology: tpu7x:2x2x1
jax: 0.10.0
libtpu: 0.0.40
codegen_flags: <defaults>
</compile_context>

<pallas_src>
import functools

import jax
import jax.numpy as jnp
from jax import lax
from jax.experimental import pallas as pl
from jax.experimental.pallas import tpu as pltpu


def _round_up(x, m):
    return ((x + m - 1) // m) * m


def _log_sigmoid(x):
    # numerically-stable logsigmoid(x) = min(x, 0) - log(1 + exp(-|x|))
    return jnp.minimum(x, 0.0) - jnp.log(1.0 + jnp.exp(-jnp.abs(x)))


def _vmem_limit_bytes():
    # ~80% of per-core VMEM, capped at 100 MiB:
    #   v5e/v6e (128 MiB/TC) -> ~100 MiB, v7x (64 MiB/TC) -> ~52 MiB.
    try:
        cap = int(pltpu.get_tpu_info().vmem_capacity_bytes)
    except Exception:
        cap = 64 * 1024 * 1024
    return min(int(cap * 0.8), 100 * 1024 * 1024)


def _skipgram_kernel(tgt_ref, ctx_ref, neg_ref, tw_ref, cwt_ref, out_ref, *,
                     batch_total, block_b, num_neg):
    # tgt_ref / ctx_ref : (Bt, 1) int32 indices
    # neg_ref           : (Bt, K) int32 indices
    # tw_ref            : (Vp, Dp) bf16 target table (VMEM resident, 1 buffer)
    # cwt_ref           : (Dp, Vp) bf16 transposed context table (resident)
    # out_ref           : (1, 1, 1) f32 per-block partial loss sum
    vocab = tw_ref.shape[0]

    tgt = tgt_ref[...]            # (Bt, 1)
    ctx = ctx_ref[...]            # (Bt, 1)
    neg = neg_ref[...]            # (Bt, K)

    iota_v = lax.broadcasted_iota(jnp.int32, (block_b, vocab), 1)    # (Bt, Vp)

    # Fused target-embedding gather: exact 0/1 one-hot matmul on the MXU
    # (bf16 one-hot x bf16 table with f32 accumulation gathers the bf16 rows
    # exactly).
    onehot_t = (tgt == iota_v).astype(jnp.bfloat16)                  # (Bt, Vp)
    te = jnp.dot(onehot_t, tw_ref[...],
                 preferred_element_type=jnp.float32)                 # (Bt, Dp)

    # All context scores in one natural-layout MXU matmul:
    #   scores[b, v] = <target_emb[tgt[b]], context_w[v]>
    # context table is pre-transposed in the wrapper -> no in-kernel transpose.
    scores = jnp.dot(te.astype(jnp.bfloat16), cwt_ref[...],
                     preferred_element_type=jnp.float32)             # (Bt, Vp)

    # Count formulation for the negatives: cnt[b, v] = #{k : neg[b, k] == v}.
    # K cheap VPU compare/adds; only ONE full-tile logsigmoid (EUP) and ONE
    # lane reduction (XLU) follow, instead of K+1 reductions.
    onehot_c = (ctx == iota_v).astype(jnp.float32)                   # (Bt, Vp)
    cnt = jnp.zeros((block_b, vocab), jnp.float32)
    for k in range(num_neg):
        cnt = cnt + (neg[:, k:k + 1] == iota_v).astype(jnp.float32)

    # logsigmoid(s) = s + logsigmoid(-s), so the positive and negative terms
    # share a single logsigmoid(-scores) tile:
    #   y[b] + y2[b] = sum_v [ onehot_c*scores + (onehot_c + cnt)*ls_neg ]
    ls_neg = _log_sigmoid(-scores)
    contrib = onehot_c * scores + (onehot_c + cnt) * ls_neg          # (Bt, Vp)

    # Mask batch-padding rows of the last tile (their logits are finite); the
    # global 1/B scale is applied once in the wrapper.
    row = (pl.program_id(0) * block_b
           + lax.broadcasted_iota(jnp.int32, (block_b, 1), 0))
    valid = (row < batch_total).astype(jnp.float32)
    out_ref[...] = jnp.broadcast_to(-jnp.sum(valid * contrib), (1, 1, 1))


def skipgram_forward(target_w, context_w, target, context, negative_samples,
                     *, block_b=None):
    """SkipGram forward loss; indices must lie in [0, vocab_size)."""
    V, D = target_w.shape
    B = target.shape[0]
    K = negative_samples.shape[1]

    # Pad embedding dim and vocab to MXU/lane-native multiples of 128.
    # Zero-padded rows/columns contribute 0 to every dot product and are never
    # selected by a valid index, so results are unchanged.
    Dp = _round_up(max(D, 128), 128)
    Vp = _round_up(max(V, 128), 128)

    # bf16 tables (f32 accumulation in the kernel keeps gathers exact).
    tw = jnp.zeros((Vp, Dp), jnp.bfloat16)
    tw = tw.at[:V, :D].set(target_w.astype(jnp.bfloat16))
    # Pre-transpose the context table ONCE in XLA -> natural-layout score
    # matmul, lane-dense on V inside the kernel.
    cw_t = jnp.zeros((Dp, Vp), jnp.bfloat16)
    cw_t = cw_t.at[:D, :V].set(context_w.T.astype(jnp.bfloat16))

    vmem_limit = _vmem_limit_bytes()

    if block_b is None:
        # Derive the batch tile from the per-core VMEM budget: single-buffered
        # bf16 tables + ~5 live f32 (Bt, Vp) tiles + a few (Bt, Dp) tiles.
        table_bytes = 2 * Vp * Dp * 2
        per_row = 5 * Vp * 4 + 4 * Dp * 4 + 8 * (K + 2)
        budget = int(vmem_limit * 0.6) - table_bytes
        bt_fit = max(budget, 0) // per_row
        if bt_fit >= 256:
            block_b = min(1024, (bt_fit // 256) * 256)
        else:
            block_b = max(8, (bt_fit // 8) * 8)
        # TODO(synk): if bt_fit is tiny the tables themselves do not fit;
        # requires the V-sharded path described at the top of the file.

    bt = min(block_b, _round_up(B, 8))
    bt = _round_up(max(bt, 8), 8)
    b_pad = _round_up(B, bt)
    grid_b = b_pad // bt

    tgt = jnp.pad(target.astype(jnp.int32).reshape(B, 1),
                  ((0, b_pad - B), (0, 0)))
    ctx = jnp.pad(context.astype(jnp.int32).reshape(B, 1),
                  ((0, b_pad - B), (0, 0)))
    neg = jnp.pad(negative_samples.astype(jnp.int32),
                  ((0, b_pad - B), (0, 0)))

    kernel = functools.partial(_skipgram_kernel,
                               batch_total=B, block_b=bt, num_neg=K)

    partials = pl.pallas_call(
        kernel,
        out_shape=jax.ShapeDtypeStruct((grid_b, 1, 1), jnp.float32),
        grid_spec=pltpu.PrefetchScalarGridSpec(
            num_scalar_prefetch=0,
            grid=(grid_b,),
            in_specs=[
                pl.BlockSpec((bt, 1), lambda i: (i, 0)),     # target indices
                pl.BlockSpec((bt, 1), lambda i: (i, 0)),     # context indices
                pl.BlockSpec((bt, K), lambda i: (i, 0)),     # negative indices
                # Loop-invariant tables: constant index_map + single buffer
                # (no 2x pipeline copies of (Vp, Dp) in VMEM).
                pl.BlockSpec((Vp, Dp), lambda i: (0, 0),
                             pipeline_mode=pl.Buffered(1)),  # target table
                pl.BlockSpec((Dp, Vp), lambda i: (0, 0),
                             pipeline_mode=pl.Buffered(1)),  # context table^T
            ],
            out_specs=pl.BlockSpec((1, 1, 1), lambda i: (i, 0, 0)),
        ),
        compiler_params=pltpu.CompilerParams(
            # Per-block partials, no serial accumulator axis -> the batch axis
            # can be split across both v7x TensorCores.
            dimension_semantics=("parallel",),
            vmem_limit_bytes=vmem_limit,
        ),
    )(tgt, ctx, neg, tw, cw_t)

    # Global 1/B, applied exactly once, outside the kernel.
    return jnp.sum(partials) / B


def skipgram_reference(target_w, context_w, target, context, negative_samples):
    te = jnp.take(target_w, target, axis=0)
    ce = jnp.take(context_w, context, axis=0)
    ne = jnp.take(context_w, negative_samples, axis=0)
    y = jax.nn.log_sigmoid(jnp.sum(te * ce, axis=1))
    y2 = jnp.sum(jax.nn.log_sigmoid(-jnp.einsum("bkd,bd->bk", ne, te)), axis=1)
    return jnp.sum(-y - y2) / target.shape[0]


if __name__ == "__main__":
    V, D = 64, 32     # vocab_size, embedding_dim
    B, K = 16, 8      # batch, negative samples per positive

    key = jax.random.PRNGKey(0)
    k_tw, k_cw, k_t, k_c, k_n = jax.random.split(key, 5)

    # Deterministic parameter init: uniform(-1, 1), matching init_weights().
    target_w = jax.random.uniform(k_tw, (V, D), jnp.float32, minval=-1.0, maxval=1.0)
    context_w = jax.random.uniform(k_cw, (V, D), jnp.float32, minval=-1.0, maxval=1.0)

    target = jax.random.randint(k_t, (B,), 0, V, dtype=jnp.int32)
    context = jax.random.randint(k_c, (B,), 0, V, dtype=jnp.int32)
    negative_samples = jax.random.randint(k_n, (B, K), 0, V, dtype=jnp.int32)

    # block_b=8 so this small demo actually exercises a multi-step grid (2 tiles).
    loss = skipgram_forward(target_w, context_w, target, context,
                            negative_samples, block_b=8)
    loss = jax.block_until_ready(loss)

    ref = skipgram_reference(target_w, context_w, target, context,
                             negative_samples)
    # Tolerance accounts for the bf16 table path (tables uniform(-1,1), D=32).
    assert jnp.allclose(loss, ref, rtol=1e-2, atol=2e-2), (loss, ref)

    print("KERNEL_OK")
</pallas_src>

<mosaic_0001>
module attributes {stable_mosaic.version = 11 : i64} {
  func.func @_skipgram_kernel(%arg0: i32, %arg1: memref<8x1xi32, #tpu.memory_space<vmem>>, %arg2: memref<8x1xi32, #tpu.memory_space<vmem>>, %arg3: memref<8x8xi32, #tpu.memory_space<vmem>>, %arg4: memref<128x128xbf16, #tpu.memory_space<vmem>>, %arg5: memref<128x128xbf16, #tpu.memory_space<vmem>>, %arg6: memref<1x1x1xf32, #tpu.memory_space<vmem>>) attributes {dimension_semantics = [#tpu.dimension_semantics<parallel>], iteration_bounds = array<i64: 2>, scalar_prefetch = 0 : i64, scratch_operands = 0 : i64, tpu.core_type = #tpu.core_type<tc>, window_params = [{transform_indices = @transform_0, window_bounds = array<i64: 8, 1>}, {transform_indices = @transform_1, window_bounds = array<i64: 8, 1>}, {transform_indices = @transform_2, window_bounds = array<i64: 8, 8>}, {pipeline_mode = #tpu.pipeline_mode<synchronous>, transform_indices = @transform_3, window_bounds = array<i64: 128, 128>}, {pipeline_mode = #tpu.pipeline_mode<synchronous>, transform_indices = @transform_4, window_bounds = array<i64: 128, 128>}, {transform_indices = @transform_5, window_bounds = array<i64: 1, 1, 1>}]} {
    %c0 = arith.constant 0 : index
    %c0_0 = arith.constant 0 : index
    %0 = vector.load %arg1[%c0, %c0_0] : memref<8x1xi32, #tpu.memory_space<vmem>>, vector<8x1xi32>
    %c0_1 = arith.constant 0 : index
    %c0_2 = arith.constant 0 : index
    %1 = vector.load %arg2[%c0_1, %c0_2] : memref<8x1xi32, #tpu.memory_space<vmem>>, vector<8x1xi32>
    %c0_3 = arith.constant 0 : index
    %c0_4 = arith.constant 0 : index
    %2 = vector.load %arg3[%c0_3, %c0_4] : memref<8x8xi32, #tpu.memory_space<vmem>>, vector<8x8xi32>
    %3 = tpu.iota {dimensions = array<i32: 1>} : vector<8x128xi32>
    %4 = vector.broadcast %0 : vector<8x1xi32> to vector<8x128xi32>
    %5 = arith.cmpi eq, %4, %3 : vector<8x128xi32>
    %6 = arith.extui %5 : vector<8x128xi1> to vector<8x128xi32>
    %7 = arith.sitofp %6 : vector<8x128xi32> to vector<8x128xf32>
    %8 = arith.truncf %7 : vector<8x128xf32> to vector<8x128xbf16>
    %c0_5 = arith.constant 0 : index
    %c0_6 = arith.constant 0 : index
    %9 = vector.load %arg4[%c0_5, %c0_6] : memref<128x128xbf16, #tpu.memory_space<vmem>>, vector<128x128xbf16>
    %cst = arith.constant dense<0.000000e+00> : vector<8x128xf32>
    %10 = tpu.matmul %8, %9, %cst {dimension_numbers = #tpu.dot_dimension_numbers<[1], [0], [0], [1], [0, 0, 1, 1], [], []>} : vector<8x128xbf16>, vector<128x128xbf16>, vector<8x128xf32> -> vector<8x128xf32>
    %11 = arith.truncf %10 : vector<8x128xf32> to vector<8x128xbf16>
    %c0_7 = arith.constant 0 : index
    %c0_8 = arith.constant 0 : index
    %12 = vector.load %arg5[%c0_7, %c0_8] : memref<128x128xbf16, #tpu.memory_space<vmem>>, vector<128x128xbf16>
    %cst_9 = arith.constant dense<0.000000e+00> : vector<8x128xf32>
    %13 = tpu.matmul %11, %12, %cst_9 {dimension_numbers = #tpu.dot_dimension_numbers<[1], [0], [0], [1], [0, 0, 1, 1], [], []>} : vector<8x128xbf16>, vector<128x128xbf16>, vector<8x128xf32> -> vector<8x128xf32>
    %14 = vector.broadcast %1 : vector<8x1xi32> to vector<8x128xi32>
    %15 = arith.cmpi eq, %14, %3 : vector<8x128xi32>
    %16 = arith.extui %15 : vector<8x128xi1> to vector<8x128xi32>
    %17 = arith.sitofp %16 : vector<8x128xi32> to vector<8x128xf32>
    %cst_10 = arith.constant 0.000000e+00 : f32
    %18 = vector.broadcast %cst_10 : f32 to vector<8x128xf32>
    %19 = vector.extract_strided_slice %2 {offsets = [0, 0], sizes = [8, 1], strides = [1, 1]} : vector<8x8xi32> to vector<8x1xi32>
    %20 = vector.broadcast %19 : vector<8x1xi32> to vector<8x128xi32>
    %21 = arith.cmpi eq, %20, %3 : vector<8x128xi32>
    %22 = arith.extui %21 : vector<8x128xi1> to vector<8x128xi32>
    %23 = arith.sitofp %22 : vector<8x128xi32> to vector<8x128xf32>
    %24 = arith.addf %18, %23 : vector<8x128xf32>
    %25 = vector.extract_strided_slice %2 {offsets = [0, 1], sizes = [8, 1], strides = [1, 1]} : vector<8x8xi32> to vector<8x1xi32>
    %26 = vector.broadcast %25 : vector<8x1xi32> to vector<8x128xi32>
    %27 = arith.cmpi eq, %26, %3 : vector<8x128xi32>
    %28 = arith.extui %27 : vector<8x128xi1> to vector<8x128xi32>
    %29 = arith.sitofp %28 : vector<8x128xi32> to vector<8x128xf32>
    %30 = arith.addf %24, %29 : vector<8x128xf32>
    %31 = vector.extract_strided_slice %2 {offsets = [0, 2], sizes = [8, 1], strides = [1, 1]} : vector<8x8xi32> to vector<8x1xi32>
    %32 = vector.broadcast %31 : vector<8x1xi32> to vector<8x128xi32>
    %33 = arith.cmpi eq, %32, %3 : vector<8x128xi32>
    %34 = arith.extui %33 : vector<8x128xi1> to vector<8x128xi32>
    %35 = arith.sitofp %34 : vector<8x128xi32> to vector<8x128xf32>
    %36 = arith.addf %30, %35 : vector<8x128xf32>
    %37 = vector.extract_strided_slice %2 {offsets = [0, 3], sizes = [8, 1], strides = [1, 1]} : vector<8x8xi32> to vector<8x1xi32>
    %38 = vector.broadcast %37 : vector<8x1xi32> to vector<8x128xi32>
    %39 = arith.cmpi eq, %38, %3 : vector<8x128xi32>
    %40 = arith.extui %39 : vector<8x128xi1> to vector<8x128xi32>
    %41 = arith.sitofp %40 : vector<8x128xi32> to vector<8x128xf32>
    %42 = arith.addf %36, %41 : vector<8x128xf32>
    %43 = vector.extract_strided_slice %2 {offsets = [0, 4], sizes = [8, 1], strides = [1, 1]} : vector<8x8xi32> to vector<8x1xi32>
    %44 = vector.broadcast %43 : vector<8x1xi32> to vector<8x128xi32>
    %45 = arith.cmpi eq, %44, %3 : vector<8x128xi32>
    %46 = arith.extui %45 : vector<8x128xi1> to vector<8x128xi32>
    %47 = arith.sitofp %46 : vector<8x128xi32> to vector<8x128xf32>
    %48 = arith.addf %42, %47 : vector<8x128xf32>
    %49 = vector.extract_strided_slice %2 {offsets = [0, 5], sizes = [8, 1], strides = [1, 1]} : vector<8x8xi32> to vector<8x1xi32>
    %50 = vector.broadcast %49 : vector<8x1xi32> to vector<8x128xi32>
    %51 = arith.cmpi eq, %50, %3 : vector<8x128xi32>
    %52 = arith.extui %51 : vector<8x128xi1> to vector<8x128xi32>
    %53 = arith.sitofp %52 : vector<8x128xi32> to vector<8x128xf32>
    %54 = arith.addf %48, %53 : vector<8x128xf32>
    %55 = vector.extract_strided_slice %2 {offsets = [0, 6], sizes = [8, 1], strides = [1, 1]} : vector<8x8xi32> to vector<8x1xi32>
    %56 = vector.broadcast %55 : vector<8x1xi32> to vector<8x128xi32>
    %57 = arith.cmpi eq, %56, %3 : vector<8x128xi32>
    %58 = arith.extui %57 : vector<8x128xi1> to vector<8x128xi32>
    %59 = arith.sitofp %58 : vector<8x128xi32> to vector<8x128xf32>
    %60 = arith.addf %54, %59 : vector<8x128xf32>
    %61 = vector.extract_strided_slice %2 {offsets = [0, 7], sizes = [8, 1], strides = [1, 1]} : vector<8x8xi32> to vector<8x1xi32>
    %62 = vector.broadcast %61 : vector<8x1xi32> to vector<8x128xi32>
    %63 = arith.cmpi eq, %62, %3 : vector<8x128xi32>
    %64 = arith.extui %63 : vector<8x128xi1> to vector<8x128xi32>
    %65 = arith.sitofp %64 : vector<8x128xi32> to vector<8x128xf32>
    %66 = arith.addf %60, %65 : vector<8x128xf32>
    %cst_11 = arith.constant 0.000000e+00 : f32
    %67 = vector.broadcast %cst_11 : f32 to vector<8x128xf32>
    %68 = arith.subf %67, %13 : vector<8x128xf32>
    %cst_12 = arith.constant 0.000000e+00 : f32
    %69 = vector.broadcast %cst_12 : f32 to vector<8x128xf32>
    %70 = arith.minimumf %68, %69 : vector<8x128xf32>
    %71 = math.absf %68 : vector<8x128xf32>
    %cst_13 = arith.constant 0.000000e+00 : f32
    %72 = vector.broadcast %cst_13 : f32 to vector<8x128xf32>
    %73 = arith.subf %72, %71 : vector<8x128xf32>
    %74 = math.exp %73 : vector<8x128xf32>
    %cst_14 = arith.constant 1.000000e+00 : f32
    %75 = vector.broadcast %cst_14 : f32 to vector<8x128xf32>
    %76 = arith.addf %75, %74 : vector<8x128xf32>
    %77 = math.log %76 : vector<8x128xf32>
    %78 = arith.subf %70, %77 : vector<8x128xf32>
    %79 = arith.mulf %17, %13 : vector<8x128xf32>
    %80 = arith.addf %17, %66 : vector<8x128xf32>
    %81 = arith.mulf %80, %78 : vector<8x128xf32>
    %82 = arith.addf %79, %81 : vector<8x128xf32>
    %c8_i32 = arith.constant 8 : i32
    %83 = arith.muli %arg0, %c8_i32 : i32
    %84 = tpu.iota {dimensions = array<i32: 0>} : vector<8x1xi32>
    %85 = vector.broadcast %83 : i32 to vector<8x1xi32>
    %86 = arith.addi %85, %84 : vector<8x1xi32>
    %c16_i32 = arith.constant 16 : i32
    %87 = vector.broadcast %c16_i32 : i32 to vector<8x1xi32>
    %88 = arith.cmpi slt, %86, %87 : vector<8x1xi32>
    %89 = arith.extui %88 : vector<8x1xi1> to vector<8x1xi32>
    %90 = arith.sitofp %89 : vector<8x1xi32> to vector<8x1xf32>
    %91 = vector.broadcast %90 : vector<8x1xf32> to vector<8x128xf32>
    %92 = arith.mulf %91, %82 : vector<8x128xf32>
    %93 = vector.shape_cast %92 : vector<8x128xf32> to vector<1x8x128xf32>
    %cst_15 = arith.constant dense<0.000000e+00> : vector<1xf32>
    %94 = vector.multi_reduction <add>, %93, %cst_15 [1, 2] : vector<1x8x128xf32> to vector<1xf32>
    %95 = vector.shape_cast %94 : vector<1xf32> to vector<1x1x1xf32>
    %96 = vector.extract %95[0, 0, 0] : f32 from vector<1x1x1xf32>
    %cst_16 = arith.constant 0.000000e+00 : f32
    %97 = arith.subf %cst_16, %96 : f32
    %98 = vector.broadcast %97 : f32 to vector<1x1x1xf32>
    %c0_17 = arith.constant 0 : index
    %c0_18 = arith.constant 0 : index
    %c0_19 = arith.constant 0 : index
    %99 = vector.load %arg6[%c0_17, %c0_18, %c0_19] : memref<1x1x1xf32, #tpu.memory_space<vmem>>, vector<1x1x1xf32>
    tpu.vector_store %arg6[%c0_17, %c0_18, %c0_19], %98 {strides = array<i32>} : memref<1x1x1xf32, #tpu.memory_space<vmem>>, vector<1x1x1xf32>,
    return
  }
  func.func @transform_0(%arg0: i32) -> (i32, i32) {
    %c0_i32 = arith.constant 0 : i32
    %c0_i32_0 = arith.constant 0 : i32
    return %arg0, %c0_i32 : i32, i32
  }
  func.func @transform_1(%arg0: i32) -> (i32, i32) {
    %c0_i32 = arith.constant 0 : i32
    %c0_i32_0 = arith.constant 0 : i32
    return %arg0, %c0_i32 : i32, i32
  }
  func.func @transform_2(%arg0: i32) -> (i32, i32) {
    %c0_i32 = arith.constant 0 : i32
    %c0_i32_0 = arith.constant 0 : i32
    return %arg0, %c0_i32 : i32, i32
  }
  func.func @transform_3(%arg0: i32) -> (i32, i32) {
    %c0_i32 = arith.constant 0 : i32
    %c0_i32_0 = arith.constant 0 : i32
    %c0_i32_1 = arith.constant 0 : i32
    return %c0_i32, %c0_i32_0 : i32, i32
  }
  func.func @transform_4(%arg0: i32) -> (i32, i32) {
    %c0_i32 = arith.constant 0 : i32
    %c0_i32_0 = arith.constant 0 : i32
    %c0_i32_1 = arith.constant 0 : i32
    return %c0_i32, %c0_i32_0 : i32, i32
  }
  func.func @transform_5(%arg0: i32) -> (i32, i32, i32) {
    %c0_i32 = arith.constant 0 : i32
    %c0_i32_0 = arith.constant 0 : i32
    %c0_i32_1 = arith.constant 0 : i32
    return %arg0, %c0_i32, %c0_i32_0 : i32, i32, i32
  }
}

</mosaic_0001>

<bundles_post_ra>
// kernel: tpu_custom_call.1
= control target key start
LH: loop header
LB: loop body
LE: loop exit
PB: predicated region body
PF: predicated region fallthrough
CT: control target
= control target key end

     0   :  { %10 = vsyncpa [#allocation3], 0  ;;  %s918_s18 = smov 0   ;;  %s1054_s0 = inlined_call_operand.vmem [shape: s32[16,1], index: 0, kind: input, shape index: {}]   ;;  %s1055_s1 = inlined_call_operand.vmem [shape: s32[16,1], index: 1, kind: input, shape index: {}]   ;;  %s1056_s2 = inlined_call_operand.vmem [shape: s32[16,8], index: 2, kind: input, shape index: {}]   ;;  %s1057_s3 = inlined_call_operand.vmem [shape: bf16[128,128], index: 3, kind: input, shape index: {}]   ;;  %s1058_s4 = inlined_call_operand.hbm [shape: bf16[128,128], index: 4, kind: input, shape index: {}]   ;;  %s1059_s5 = inlined_call_operand.vmem [shape: f32[2,1,1], index: 5, kind: output, shape index: {}]  }
   0x1 LB: > { %s924_s19 = sadd.s32 4294967295, %s872_s18   ;;  %p672_p0 = scmp.ge.s32.totalorder %s872_s18, 1  ;;  %s872_s18 = sphi %s918_s18, %s16_s18  }
   0x2   : > { %p167_p1 = scmp.lt.s32.totalorder %s872_s18, 3  ;;  %s874_s20 = smov [#allocation2]  }
   0x3   : > { %s182_s21 = sshll.u32 %s874_s20, 4  ;;  %p1060_p3 = scmp.eq.s32.totalorder %s924_s19, 0  ;;  %s183_s21 = int_to_ptr.vmem [resolvable:$true] %s182_s21 }
   0x4   : > { %p928_p2 = pnand %p672_p0, %p167_p1  ;;  %s834_s26 = scalar_lea.hbm %s1058_s4, 1024 }
   0x5   : > { %p835_p6 = scmp.ne.s32.totalorder %s1058_s4, %s834_s26  ;;  %p841_p10 = scmp.lt.u32.totalorder %s834_s26, %s1058_s4 }
   0x6   : > { %s1062_s22 = scalar_select %p928_p2, 1, 0 }
   0x7   : > { %p776_p4 = pneg %p928_p2 }
   0x9   : > { %p937_p5 = pnand %p1060_p3, %p776_p4 }
   0xb   : > { %p836_p7 = pneg %p937_p5 }
   0xd   : > { %p837_p8 = pnand %p836_p7, %p835_p6 }
   0xf   : > { %p838_p9 = pneg %p837_p8 }
  0x11   : > { %p843_p11 = pnand %p841_p10, %p838_p9 }
  0x13   : > { %846 = shalt.err (!%p843_p11)
}
  0x14   : > { %s847_s6 = scalar_lea.vmem %s183_s21, 1024  ;;  %p855_p1 = scmp.lt.s32.totalorder %s183_s21, %s183_s21 }
  0x15   : > { %p848_p12 = scmp.ne.s32.totalorder %s183_s21, %s847_s6  ;;  %p856_p4 = scmp.lt.s32.totalorder %s847_s6, %s847_s6 }
  0x17   : > { %p850_p13 = pnand %p848_p12, %p836_p7  ;;  %p857_p3 = por %p856_p4, %p855_p1 }
  0x19   : > { %p851_p0 = pneg %p850_p13 }
  0x1b   : > { %p858_p2 = pnand %p857_p3, %p851_p0 }
  0x1d   : > { %861 = shalt.err (!%p858_p2)
}
  0x1e   : > { %s875_s7 = smov 64   ;;  %s876_s8 = smov 4  }
  0x1f   : > { %779 = dma.hbm_to_vmem [thread:$0]  (!%p937_p5), %s1058_s4, 1024, %s183_s21, [#allocation3], %s875_s7, %s875_s7, %s876_s8  }
  0x20   : > { %p1064_p6 = scmp.ne.s32.totalorder %s1062_s22, 0 }
  0x21   : > { %p1065_p8 = scmp.eq.s32.totalorder (!%p1064_p6), %s924_s19, 0 }
  0x22   : > { %219 = sbr.rel (%p1064_p6) target bundleno = 856 (0x358), region = 40 }
  0x29   : > { %867 = dma.done.wait (%p1065_p8), [#allocation3], 1024   ;;  %p1066_p7 = pmov %p1065_p8 }
  0x2a   : > { %p252_p2 = scmp.lt.s32.totalorder %s924_s19, 1  ;;  %v877_v0 = vmov 1   ;;  %v878_v1 = vmov 0   ;;  %v879_v2 = vmov 0.0   ;;  %v814_v5 = vld [vmem:[%s1057_s3] sm:$0xff]   ;;  %vm880_vm0 = vmmov 0  }
  0x2b   : > { %869 = vsyncadd (%p1066_p7), [#allocation3], 4294966272  ;;  %805 = vset.pattern.permute.xlu1 %v877_v0  ;;  %804 = vset.pattern.permute.xlu0 %v878_v1  ;;  %v815_v6 = vld [vmem:[%s1057_s3 + $0x8] sm:$0xff]   ;;  %v881_v7 = vmov 2   ;;  %v816_v8 = vld [vmem:[%s1057_s3 + $0x10] sm:$0xff]   ;;  %v882_v9 = vmov 3   ;;  %v271_v27 = vlaneseq }
  0x2c   : > { %s965_s11 = scalar_select %p252_p2, %s924_s19, 1  ;;  %730 = vmatprep.subr.bf16.mxu0 %v879_v2  ;;  %750 = vmatprep.subr.bf16.mxu1 %v879_v2  ;;  %v883_v10 = vmov 4   ;;  %v817_v11 = vld [vmem:[%s1057_s3 + $0x18] sm:$0xff]   ;;  %v884_v12 = vmov 6   ;;  %v885_v13 = vmov 5   ;;  %v818_v14 = vld [vmem:[%s1057_s3 + $0x20] sm:$0xff]  }
  0x2d   : > { %746 = vmatprep.mubr.msk.bf16.mxu0 %vm880_vm0, %v879_v2  ;;  %766 = vmatprep.mubr.msk.bf16.mxu1 %vm880_vm0, %v879_v2  ;;  %v886_v15 = vmov 7   ;;  %v819_v16 = vld [vmem:[%s1057_s3 + $0x28] sm:$0xff]   ;;  %v820_v18 = vld [vmem:[%s1057_s3 + $0x30] sm:$0xff]   ;;  %v821_v19 = vld [vmem:[%s1057_s3 + $0x38] sm:$0xff]   ;;  %v1024_v28 = vand.u32 127, %v271_v27  ;;  %s708_s16 = sshll.u32 %s924_s19, 3 }
  0x2e   : > { %s970_s12 = sshll.u32 %s965_s11, 3  ;;  %731 = vmatpush3.bf16.msra.mxu0 %v814_v5  ;;  %v822_v20 = vld [vmem:[#allocation2] sm:$0xff]   ;;  %v823_v21 = vld [vmem:[#allocation2 + $0x8] sm:$0xff]   ;;  %v824_v22 = vld [vmem:[#allocation2 + $0x10] sm:$0xff]   ;;  %v887_v30 = vmov 1.0|1.0   ;;  %s266_s21 = scalar_lea.vmem %s1059_s5, %s965_s11 }
  0x2f   : > { %s263_s15 = scalar_lea.vmem %s1056_s2, %s970_s12  ;;  %s255_s20 = scalar_lea.vmem %s1054_s0, %s970_s12  ;;  %732 = vmatprep.subr.bf16.mxu0 %v879_v2  ;;  %751 = vmatpush3.bf16.msra.mxu1 %v822_v20  ;;  %v825_v23 = vld [vmem:[#allocation2 + $0x18] sm:$0xff]   ;;  %v826_v24 = vld [vmem:[#allocation2 + $0x20] sm:$0xff]   ;;  %v827_v25 = vld [vmem:[#allocation2 + $0x28] sm:$0xff]   ;;  %vm585_vm13 = vcmask 0  }
  0x30   : > { %v270_v3 = vld [vmem:[%s263_s15] sm:$0xff]  ;;  %s259_s8 = scalar_lea.vmem %s1055_s1, %s970_s12  ;;  %752 = vmatprep.subr.bf16.mxu1 %v879_v2  ;;  %v828_v26 = vld [vmem:[#allocation2 + $0x30] sm:$0xff]   ;;  %v829_v31 = vld [vmem:[#allocation2 + $0x38] sm:$0xff]  }
  0x31   : > { %v268_v4 = vld [vmem:[%s255_s20] sm:$0xff]  ;;  %503 = vperm.xlu1 %805, %v270_v3  }
  0x32   : > { %274 = vperm.xlu0 %804, %v268_v4   ;;  %733 = vmatpush3.bf16.msra.mxu0 %v815_v6  ;;  %v269_v17 = vld [vmem:[%s259_s8] sm:$0xff] }
  0x33   : > { %734 = vmatprep.subr.bf16.mxu0 %v879_v2  ;;  %753 = vmatpush3.bf16.msra.mxu1 %v823_v21 }
  0x34   : > { %754 = vmatprep.subr.bf16.mxu1 %v879_v2 }
  0x35   : > { %806 = vset.pattern.permute.xlu1 %v881_v7  ;;  %v567_v7 = vshrl.u32 %v271_v27, 7 }
  0x36   : > { %496 = vperm.xlu0 %804, %v270_v3   ;;  %510 = vperm.xlu1 %806, %v270_v3  }
  0x37   : > { %735 = vmatpush3.bf16.msra.mxu0 %v816_v8  ;;  %755 = vmatpush3.bf16.msra.mxu1 %v824_v22  ;;  %v568_v8 = vstv %s708_s16 }
  0x38   : > { %736 = vmatprep.subr.bf16.mxu0 %v879_v2  ;;  %756 = vmatprep.subr.bf16.mxu1 %v879_v2 }
  0x3a   : > { %807 = vset.pattern.permute.xlu0 %v882_v9  ;;  %808 = vset.pattern.permute.xlu1 %v883_v10 }
  0x3b   : > { %517 = vperm.xlu0 %807, %v270_v3   ;;  %524 = vperm.xlu1 %808, %v270_v3  }
  0x3c   : > { %737 = vmatpush3.bf16.msra.mxu0 %v817_v11  ;;  %757 = vmatpush3.bf16.msra.mxu1 %v825_v23  ;;  %v569_v11 = vadd.s32 %v568_v8, %v567_v7 }
  0x3d   : > { %738 = vmatprep.subr.bf16.mxu0 %v879_v2  ;;  %758 = vmatprep.subr.bf16.mxu1 %v879_v2 }
  0x3e   : > { %vm570_vm12 = vcmp.lt.s32.totalorder %v569_v11, 16 }
  0x3f   : > { %810 = vset.pattern.permute.xlu0 %v884_v12  ;;  %809 = vset.pattern.permute.xlu1 %v885_v13 }
  0x40   : > { %538 = vperm.xlu0 %810, %v270_v3   ;;  %531 = vperm.xlu1 %809, %v270_v3  }
  0x41   : > { %739 = vmatpush3.bf16.msra.mxu0 %v818_v14  ;;  %759 = vmatpush3.bf16.msra.mxu1 %v826_v24 }
  0x42   : > { %740 = vmatprep.subr.bf16.mxu0 %v879_v2  ;;  %760 = vmatprep.subr.bf16.mxu1 %v879_v2 }
  0x44   : > { %813 = vset.pattern.permute.xlu0 %v886_v15  ;;  %811 = vset.pattern.permute.xlu1 %v886_v15 }
  0x45   : > { %545 = vperm.xlu1 %811, %v270_v3   ;;  %741 = vmatpush3.bf16.msra.mxu0 %v819_v16 }
  0x46   : > { %742 = vmatprep.subr.bf16.mxu0 %v879_v2  ;;  %761 = vmatpush3.bf16.msra.mxu1 %v827_v25 }
  0x47   : > { %762 = vmatprep.subr.bf16.mxu1 %v879_v2 }
  0x49   : > { %812 = vset.pattern.permute.xlu1 %v878_v1  ;;  %743 = vmatpush3.bf16.msra.mxu0 %v820_v18 }
  0x4a   : > { %490 = vperm.xlu1 %812, %v269_v17   ;;  %744 = vmatprep.subr.bf16.mxu0 %v879_v2 }
  0x4b   : > { %763 = vmatpush3.bf16.msra.mxu1 %v828_v26 }
  0x4c   : > { %764 = vmatprep.subr.bf16.mxu1 %v879_v2 }
  0x4d   : > { %745 = vmatpush3.bf16.msra.mxu0 %v821_v19  ;;  %v709_v19 = vsel %vm570_vm12, 1.0, %v879_v2 }
  0x4f   : > { %765 = vmatpush3.bf16.msra.mxu1 %v829_v31 }
  0xb0   : > { %v504_v37 = vpop.permute.xlu1 %503 }
  0xb1   : > { %v275_v29 = vpop.permute.xlu0 %274  ;;  %vm505_vm4 = vcmp.eq.s32.totalorder %v504_v37, %v1024_v28 }
  0xb2   : > { %vm276_vm1 = vcmp.eq.s32.totalorder %v275_v29, %v1024_v28  ;;  %v701_v54 = vsel %vm505_vm4, 1.0, %v879_v2 }
  0xb3   : > { %vm689_vm2 = vmpackc.low %vm276_vm1, %vm276_vm1 }
  0xb4   : > { %747 = vmatmul.mubr.msk.bf16.vlgmr.msra.gmra.mrb[0].mxu0 %vm689_vm2, %v887_v30 }
  0xb5   : > { %v511_v38 = vpop.permute.xlu1 %510  ;;  %v497_v48 = vpop.permute.xlu0 %496 }
  0xb6   : > { %vm498_vm5 = vcmp.eq.s32.totalorder %v497_v48, %v1024_v28  ;;  %vm512_vm6 = vcmp.eq.s32.totalorder %v511_v38, %v1024_v28 }
  0xb7   : > { %v700_v55 = vsel %vm498_vm5, 1.0, %v879_v2  ;;  %v702_v58 = vsel %vm512_vm6, 1.0, %v879_v2 }
  0xb8   : > { %v508_v57 = vadd.f32 %v701_v54, %v700_v55 }
  0xba   : > { %v525_v39 = vpop.permute.xlu1 %524  ;;  %v518_v56 = vpop.permute.xlu0 %517  ;;  %v515_v59 = vadd.f32 %v702_v58, %v508_v57 }
  0xbb   : > { %vm519_vm7 = vcmp.eq.s32.totalorder %v518_v56, %v1024_v28  ;;  %vm526_vm8 = vcmp.eq.s32.totalorder %v525_v39, %v1024_v28 }
  0xbc   : > { %v703_v60 = vsel %vm519_vm7, 1.0, %v879_v2  ;;  %v704_v63 = vsel %vm526_vm8, 1.0, %v879_v2 }
  0xbd   : > { %v522_v62 = vadd.f32 %v703_v60, %v515_v59 }
  0xbf   : > { %v532_v40 = vpop.permute.xlu1 %531  ;;  %v539_v0 = vpop.permute.xlu0 %538  ;;  %v529_v4 = vadd.f32 %v704_v63, %v522_v62 }
  0xc0   : > { %vm533_vm9 = vcmp.eq.s32.totalorder %v532_v40, %v1024_v28  ;;  %vm540_vm10 = vcmp.eq.s32.totalorder %v539_v0, %v1024_v28 }
  0xc1   : > { %v705_v3 = vsel %vm533_vm9, 1.0, %v879_v2  ;;  %v706_v6 = vsel %vm540_vm10, 1.0, %v879_v2 }
  0xc2   : > { %v536_v5 = vadd.f32 %v705_v3, %v529_v4 }
  0xc4   : > { %v546_v41 = vpop.permute.xlu1 %545  ;;  %v543_v9 = vadd.f32 %v706_v6, %v536_v5 }
  0xc5   : > { %vm547_vm11 = vcmp.eq.s32.totalorder %v546_v41, %v1024_v28 }
  0xc6   : > { %v707_v10 = vsel %vm547_vm11, 1.0, %v879_v2 }
  0xc7   : > { %v550_v13 = vadd.f32 %v707_v10, %v543_v9 }
  0xc9   : > { %v491_v42 = vpop.permute.xlu1 %490 }
  0xca   : > { %vm492_vm3 = vcmp.eq.s32.totalorder %v491_v42, %v1024_v28 }
  0xcb   : > { %v699_v43 = vsel %vm492_vm3, 1.0, %v879_v2 }
  0xcc   : > { %v562_v16 = vadd.f32 %v699_v43, %v550_v13 }
 0x187   : > { %v378_v32 = vpop.f32.mrb[0].mxu0 }
 0x188   : > { %v384_v33 = vpack.c.bf16 %v378_v32, %v378_v32  ;;  %v748_v34 = vpop.f32.mrb[1].mxu0 }
 0x189   : > { %v381_v35 = vpop.f32.mrb[2].mxu0 }
 0x18a   : > { %v749_v36 = vpop.f32.mrb[3].mxu0  ;;  %767 = vmatmul.mubr.bf16.vlgmr.msra.gmra.mrb[0].mxu1 %v384_v33 }
 0x25d   : > { %v483_v44 = vpop.f32.mrb[0].mxu1 }
 0x25e   : > { %v551_v45 = vsub.f32 0.0, %v483_v44  ;;  %v561_v46 = vmul.f32 %v699_v43, %v483_v44  ;;  %v768_v47 = vpop.f32.mrb[1].mxu1 }
 0x25f   : > { %v486_v49 = vpop.f32.mrb[2].mxu1 }
 0x260   : > { %v553_v50 = vand.u32 2147483647, %v551_v45  ;;  %v769_v51 = vpop.f32.mrb[3].mxu1  ;;  %v552_v14 = vmin.f32 %v551_v45, 0.0 }
 0x262   : > { %v554_v52 = vsub.f32 0.0, %v553_v50 }
 0x264   : > { %v555_v53 = vmul.f32 1.442695, %v554_v52 }
 0x266   : > { %830 = vpow2.f32 %v555_v53 }
 0x270   : > { %v831_v61 = vpop.eup %830 }
 0x271   : > { %v557_v1 = vadd.f32 1.0, %v831_v61 }
 0x273   : > { %832 = vlog2.f32 %v557_v1 }
 0x27d   : > { %v833_v12 = vpop.eup %832 }
 0x27e   : > { %v559_v15 = vmul.f32 0.6931472, %v833_v12 }
 0x280   : > { %v560_v17 = vsub.f32 %v552_v14, %v559_v15 }
 0x282   : > { %v563_v18 = vmul.f32 %v562_v16, %v560_v17 }
 0x284   : > { %v564_v20 = vadd.f32 %v563_v18, %v561_v46 }
 0x286   : > { %v573_v21 = vmul.f32 %v709_v19, %v564_v20 }
 0x288   : > { %574 = vadd.xlane.f32.xlu0 %v573_v21 }
 0x315   : > { %v575_v22 = vpop.xlane.xlu0 %574 }
 0x316   : > { %v576_v23 = vrot.slane %v575_v22, 4 }
 0x318   : > { %v577_v24 = vadd.f32 %v576_v23, %v575_v22 }
 0x31a   : > { %v578_v25 = vrot.slane %v577_v24, 2 }
 0x31c   : > { %v579_v26 = vadd.f32 %v578_v25, %v577_v24 }
 0x31e   : > { %v580_v27 = vrot.slane %v579_v26, 1 }
 0x320   : > { %v581_v28 = vadd.f32 %v580_v27, %v579_v26 }
 0x322   : > { %770 = vpush %v581_v28 }
 0x353   : > { %s771_s19 = spop %770 }
 0x354   : > { %s583_s22 = ssub.f32 0.0, %s771_s19 }
 0x356   : > { %v584_v29 = vstv %s583_s22 }
 0x357   : > { %586 = vst.msk [vmem:[%s266_s21] sm:$0x1] %vm585_vm13, %v584_v29 }
 0x358 PF: > { %s16_s18 = sadd.s32 1, %s872_s18  }
 0x359   : > { %p13_p3 = scmp.ge.s32.totalorder %s16_s18, 4  }
 0x35b   :  { %15 = sbr.rel (!%p13_p3) target bundleno = 1 (0x1), region = 81 }
 0x362   :  { %604 = vsyncpa [#allocation3], 1 }
 0x363   :  { %606 = vsyncpa [#allocation3 + $0x1], 1 }

</bundles_post_ra>
